<compile_context>
chip_gen: v7x
topology: tpu7x:2x2x1
jax: 0.10.0
libtpu: 0.0.40
codegen_flags: <defaults>
</compile_context>

<pallas_src>
import jax
import jax.numpy as jnp
from jax import lax
from jax.experimental import pallas as pl
from jax.experimental.pallas import tpu as pltpu


def _logistic_kernel(x_ref, w_ref, b_ref, o_ref, acc_ref):
    # x_ref:   (TILE_B, TILE_F) VMEM tile of input rows (streamed).
    # w_ref:   (1, TILE_F)      VMEM weight chunk (resident across batch tiles).
    # b_ref:   (1, 1)           SMEM scalar bias.
    # o_ref:   (1, 1, TILE_B)   lane-dense output slab (batch on lane axis).
    # acc_ref: (1, TILE_B)      f32 accumulator over the F (reduction) axis.
    k = pl.program_id(1)

    @pl.when(k == 0)
    def _():
        acc_ref[...] = jnp.zeros_like(acc_ref)

    # (1, TILE_F) . (TILE_B, TILE_F)^T -> (1, TILE_B): contract the feature
    # axis of both operands so the batch dim lands on the lane axis and the
    # final store is an unmasked, lane-dense vst.
    acc_ref[...] += lax.dot_general(
        w_ref[...], x_ref[...],
        dimension_numbers=(((1,), (1,)), ((), ())),
        preferred_element_type=jnp.float32,
    )

    @pl.when(k == pl.num_programs(1) - 1)
    def _():
        y = acc_ref[...] + b_ref[0, 0]
        # Tiny epilogue (TILE_B elems); exp goes to the EUP, fully hidden
        # under the x DMA.  Saturates gracefully to 0/1 for large |y|.
        o_ref[0] = 1.0 / (1.0 + jnp.exp(-y))


def _round_up(n: int, m: int) -> int:
    return ((n + m - 1) // m) * m


def _tpu_generation() -> int:
    """Best-effort TPU generation (5/6/7); falls back to 6."""
    try:
        kind = jax.devices()[0].device_kind.lower()
    except Exception:  # pragma: no cover - defensive
        return 6
    for g in (7, 6, 5, 4):
        if str(g) in kind:
            return g
    return 6


def logistic_regression(x, w, b, *, stream_bf16=False, target_tile_bytes=None):
    """x: (B, F), w: (1, F) (PyTorch Linear layout), b: (1,) -> sigmoid(x @ w.T + b), shape (B, 1)."""
    B, F = x.shape

    compute_dtype = jnp.bfloat16 if stream_bf16 else jnp.float32
    x = jnp.asarray(x, compute_dtype)
    w = jnp.asarray(w, compute_dtype).reshape(1, F)
    b2 = jnp.asarray(b, jnp.float32).reshape(1, 1)
    elem_bytes = jnp.dtype(compute_dtype).itemsize

    gen = _tpu_generation()

    # Bytes-targeted tile: the kernel is pure HBM-bandwidth bound, so size the
    # streamed x tile to hide the ~0.35 us per-grid-step overhead on each
    # generation's HBM speed.
    if target_tile_bytes is None:
        target_tile_bytes = {5: 2, 6: 4, 7: 8}.get(gen, 4) * 1024 * 1024

    rows_for_budget = target_tile_bytes // (elem_bytes * F)
    if rows_for_budget >= 512:
        # Normal case: full feature width per tile, no reduction axis.
        tile_f = F
        tile_b = rows_for_budget
    else:
        # Very wide F: keep the batch tile large and tile the feature
        # (reduction) axis instead, accumulating in f32 scratch.
        tile_b = 512
        tile_f = max(128, ((target_tile_bytes // (elem_bytes * tile_b)) // 128) * 128)
        tile_f = min(tile_f, _round_up(F, 128))

    # 128-align tile_b (lane-dense output, clean x tiling) and clamp to batch.
    tile_b = max(128, (tile_b // 128) * 128)
    tile_b = min(tile_b, _round_up(B, 128))

    # v7x: two TensorCores each with their own HBM path -> make sure the
    # "parallel" batch axis has >= 4 tiles (>= 2 per TC) when B allows it.
    if gen >= 7 and B > 128:
        tile_b = min(tile_b, max(128, ((B // 4) // 128) * 128))

    # Pad batch (and, if F-tiled, features) with zeros.  Padded rows compute
    # sigmoid(bias) and are sliced away below; padded feature columns are zero
    # in both x and w so they do not change the dot product.
    bp = _round_up(B, tile_b)
    fp = F if tile_f == F else _round_up(F, tile_f)
    if bp != B or fp != F:
        x = jnp.pad(x, ((0, bp - B), (0, fp - F)))
    if fp != F:
        w = jnp.pad(w, ((0, 0), (0, fp - F)))

    num_tiles = bp // tile_b
    num_k = fp // tile_f

    # VMEM budget: double-buffered x tile dominates; cap per generation
    # (v7x has 64 MiB physical VMEM, v5e/v6e have 128 MiB).
    x_tile_bytes = tile_b * tile_f * elem_bytes
    vmem_cap = (48 if gen >= 7 else 96) * 1024 * 1024
    vmem_limit = int(min(vmem_cap, max(32 * 1024 * 1024, 4 * x_tile_bytes)))

    cost = pl.CostEstimate(
        flops=2 * B * F,
        transcendentals=B,
        bytes_accessed=B * F * elem_bytes + F * elem_bytes + B * 4 + 4,
    )

    out = pl.pallas_call(
        _logistic_kernel,
        out_shape=jax.ShapeDtypeStruct((num_tiles, 1, tile_b), jnp.float32),
        grid_spec=pltpu.PrefetchScalarGridSpec(
            num_scalar_prefetch=0,
            grid=(num_tiles, num_k),
            in_specs=[
                pl.BlockSpec((tile_b, tile_f), lambda i, k: (i, k)),   # x: streamed
                pl.BlockSpec((1, tile_f), lambda i, k: (0, k)),        # w: resident per k
                pl.BlockSpec(memory_space=pltpu.MemorySpace.SMEM),     # bias scalar
            ],
            out_specs=pl.BlockSpec((1, 1, tile_b), lambda i, k: (i, 0, 0)),
            scratch_shapes=[pltpu.VMEM((1, tile_b), jnp.float32)],
        ),
        compiler_params=pltpu.CompilerParams(
            # Batch tiles are independent -> shard across v7x's 2 TCs; the F
            # axis is a reduction -> "arbitrary".
            dimension_semantics=("parallel", "arbitrary"),
            vmem_limit_bytes=vmem_limit,
        ),
        cost_estimate=cost,
    )(x, w, b2)

    # Lane-dense (num_tiles, 1, tile_b) slab -> (B, 1) column, dropping padding.
    return out.reshape(bp)[:B].reshape(B, 1)


def reference(x, w, b):
    return jax.nn.sigmoid(jnp.asarray(x, jnp.float32) @ jnp.asarray(w, jnp.float32).T
                          + jnp.asarray(b, jnp.float32).reshape(1, 1))


if __name__ == "__main__":
    key = jax.random.PRNGKey(0)

    def make_case(key, batch, n_features):
        kx, kw, kb, key = jax.random.split(key, 4)
        x = jax.random.normal(kx, (batch, n_features), dtype=jnp.float32)
        bound = 1.0 / (n_features ** 0.5)   # mimics nn.Linear default init bound
        w = jax.random.uniform(kw, (1, n_features), dtype=jnp.float32,
                               minval=-bound, maxval=bound)
        b = jax.random.uniform(kb, (1,), dtype=jnp.float32,
                               minval=-bound, maxval=bound)
        return key, x, w, b

    # (batch, n_features): small single tile, ragged padded tile, multi-tile.
    for batch, n_features in [(16, 32), (300, 128), (1100, 128)]:
        key, x, w, b = make_case(key, batch, n_features)
        out = jax.block_until_ready(logistic_regression(x, w, b))
        ref = reference(x, w, b)
        assert out.shape == (batch, 1), out.shape
        assert jnp.allclose(out, ref, atol=1e-5, rtol=1e-5), (
            float(jnp.max(jnp.abs(out - ref))))

    # Force the wide-F (reduction-tiled) path deterministically with a tiny
    # per-tile byte budget: tile_f=128, num_k>1, f32 accumulator exercised.
    key, x, w, b = make_case(key, 300, 512)
    out = jax.block_until_ready(
        logistic_regression(x, w, b, target_tile_bytes=64 * 1024))
    ref = reference(x, w, b)
    assert out.shape == (300, 1)
    assert jnp.allclose(out, ref, atol=1e-5, rtol=1e-5), (
        float(jnp.max(jnp.abs(out - ref))))

    # Optional bf16-streaming path (halves HBM bytes); looser tolerance.
    key, x, w, b = make_case(key, 300, 128)
    out = jax.block_until_ready(logistic_regression(x, w, b, stream_bf16=True))
    ref = reference(x, w, b)
    assert out.shape == (300, 1)
    assert jnp.allclose(out, ref, atol=5e-2, rtol=5e-2), (
        float(jnp.max(jnp.abs(out - ref))))

    print("KERNEL_OK")
</pallas_src>

<mosaic_0001>
module attributes {stable_mosaic.version = 11 : i64} {
  func.func @_logistic_kernel(%arg0: i32, %arg1: i32, %arg2: memref<128x32xf32, #tpu.memory_space<vmem>>, %arg3: memref<1x32xf32, #tpu.memory_space<vmem>>, %arg4: memref<1x1xf32, #tpu.memory_space<smem>>, %arg5: memref<1x1x128xf32, #tpu.memory_space<vmem>>, %arg6: memref<1x128xf32, #tpu.memory_space<vmem>>) attributes {dimension_semantics = [#tpu.dimension_semantics<parallel>, #tpu.dimension_semantics<arbitrary>], iteration_bounds = array<i64: 1, 1>, scalar_prefetch = 0 : i64, scratch_operands = 1 : i64, tpu.core_type = #tpu.core_type<tc>, window_params = [{transform_indices = @transform_0, window_bounds = array<i64: 128, 32>}, {transform_indices = @transform_1, window_bounds = array<i64: 1, 32>}, {transform_indices = @transform_2, window_bounds = array<i64: 1, 1>}, {transform_indices = @transform_3, window_bounds = array<i64: 1, 1, 128>}]} {
    %c0_i32 = arith.constant 0 : i32
    %0 = arith.cmpi eq, %arg1, %c0_i32 : i32
    %1 = arith.extui %0 : i1 to i32
    %c0_i32_0 = arith.constant 0 : i32
    %2 = arith.cmpi ne, %1, %c0_i32_0 : i32
    scf.if %2 {
      %cst_10 = arith.constant 0.000000e+00 : f32
      %12 = vector.broadcast %cst_10 : f32 to vector<1x128xf32>
      %c0_11 = arith.constant 0 : index
      %c0_12 = arith.constant 0 : index
      %13 = vector.load %arg6[%c0_11, %c0_12] : memref<1x128xf32, #tpu.memory_space<vmem>>, vector<1x128xf32>
      tpu.vector_store %arg6[%c0_11, %c0_12], %12 {strides = array<i32>} : memref<1x128xf32, #tpu.memory_space<vmem>>, vector<1x128xf32>,
    } else {
    }
    %c0 = arith.constant 0 : index
    %c0_1 = arith.constant 0 : index
    %3 = vector.load %arg6[%c0, %c0_1] : memref<1x128xf32, #tpu.memory_space<vmem>>, vector<1x128xf32>
    %c0_2 = arith.constant 0 : index
    %c0_3 = arith.constant 0 : index
    %4 = vector.load %arg3[%c0_2, %c0_3] : memref<1x32xf32, #tpu.memory_space<vmem>>, vector<1x32xf32>
    %c0_4 = arith.constant 0 : index
    %c0_5 = arith.constant 0 : index
    %5 = vector.load %arg2[%c0_4, %c0_5] : memref<128x32xf32, #tpu.memory_space<vmem>>, vector<128x32xf32>
    %cst = arith.constant dense<0.000000e+00> : vector<1x128xf32>
    %6 = tpu.matmul %4, %5, %cst {dimension_numbers = #tpu.dot_dimension_numbers<[1], [1], [0], [0], [0, 0, 1, 0], [], []>} : vector<1x32xf32>, vector<128x32xf32>, vector<1x128xf32> -> vector<1x128xf32>
    %7 = arith.addf %3, %6 : vector<1x128xf32>
    %c0_6 = arith.constant 0 : index
    %c0_7 = arith.constant 0 : index
    %8 = vector.load %arg6[%c0_6, %c0_7] : memref<1x128xf32, #tpu.memory_space<vmem>>, vector<1x128xf32>
    tpu.vector_store %arg6[%c0_6, %c0_7], %7 {strides = array<i32>} : memref<1x128xf32, #tpu.memory_space<vmem>>, vector<1x128xf32>,
    %c0_i32_8 = arith.constant 0 : i32
    %9 = arith.cmpi eq, %arg1, %c0_i32_8 : i32
    %10 = arith.extui %9 : i1 to i32
    %c0_i32_9 = arith.constant 0 : i32
    %11 = arith.cmpi ne, %10, %c0_i32_9 : i32
    scf.if %11 {
      %c0_10 = arith.constant 0 : index
      %c0_11 = arith.constant 0 : index
      %12 = vector.load %arg6[%c0_10, %c0_11] : memref<1x128xf32, #tpu.memory_space<vmem>>, vector<1x128xf32>
      %c0_12 = arith.constant 0 : index
      %c0_13 = arith.constant 0 : index
      %13 = memref.load %arg4[%c0_12, %c0_13] : memref<1x1xf32, #tpu.memory_space<smem>>
      %14 = vector.broadcast %13 : f32 to vector<1x128xf32>
      %15 = arith.addf %12, %14 : vector<1x128xf32>
      %cst_14 = arith.constant 0.000000e+00 : f32
      %16 = vector.broadcast %cst_14 : f32 to vector<1x128xf32>
      %17 = arith.subf %16, %15 : vector<1x128xf32>
      %18 = math.exp %17 : vector<1x128xf32>
      %cst_15 = arith.constant 1.000000e+00 : f32
      %19 = vector.broadcast %cst_15 : f32 to vector<1x128xf32>
      %20 = arith.addf %19, %18 : vector<1x128xf32>
      %cst_16 = arith.constant 1.000000e+00 : f32
      %21 = vector.broadcast %cst_16 : f32 to vector<1x128xf32>
      %22 = arith.divf %21, %20 : vector<1x128xf32>
      %c0_17 = arith.constant 0 : index
      %c0_18 = arith.constant 0 : index
      %c0_19 = arith.constant 0 : index
      %23 = vector.load %arg5[%c0_17, %c0_18, %c0_19] : memref<1x1x128xf32, #tpu.memory_space<vmem>>, vector<1x1x128xf32>
      %24 = vector.shape_cast %23 : vector<1x1x128xf32> to vector<1x128xf32>
      %25 = vector.shape_cast %22 : vector<1x128xf32> to vector<1x1x128xf32>
      tpu.vector_store %arg5[%c0_17, %c0_18, %c0_19], %25 {strides = array<i32>} : memref<1x1x128xf32, #tpu.memory_space<vmem>>, vector<1x1x128xf32>,
    } else {
    }
    return
  }
  func.func @transform_0(%arg0: i32, %arg1: i32) -> (i32, i32) {
    %c0_i32 = arith.constant 0 : i32
    return %arg0, %arg1 : i32, i32
  }
  func.func @transform_1(%arg0: i32, %arg1: i32) -> (i32, i32) {
    %c0_i32 = arith.constant 0 : i32
    %c0_i32_0 = arith.constant 0 : i32
    return %c0_i32, %arg1 : i32, i32
  }
  func.func @transform_2(%arg0: i32, %arg1: i32) -> (i32, i32) {
    %c0_i32 = arith.constant 0 : i32
    %c0_i32_0 = arith.constant 0 : i32
    %c0_i32_1 = arith.constant 0 : i32
    return %c0_i32, %c0_i32_0 : i32, i32
  }
  func.func @transform_3(%arg0: i32, %arg1: i32) -> (i32, i32, i32) {
    %c0_i32 = arith.constant 0 : i32
    %c0_i32_0 = arith.constant 0 : i32
    %c0_i32_1 = arith.constant 0 : i32
    return %arg0, %c0_i32, %c0_i32_0 : i32, i32, i32
  }
}

</mosaic_0001>

<bundles_post_ra>
// kernel: tpu_custom_call.1
= control target key start
LH: loop header
LB: loop body
LE: loop exit
PB: predicated region body
PF: predicated region fallthrough
CT: control target
= control target key end

     0   :  { %vm39_vm0 = vcmask 261120   ;;  %v324_v2 = vmov 0.0|0.0   ;;  %v325_v5 = vmov 0.0   ;;  %vm326_vm2 = vmmov 0   ;;  %s437_s0 = inlined_call_operand.vmem [shape: f32[128,32], index: 0, kind: input, shape index: {}]   ;;  %s438_s1 = inlined_call_operand.vmem [shape: f32[1,32], index: 1, kind: input, shape index: {}]   ;;  %s439_s2 = inlined_call_operand.<no memory space> [shape: f32[1,1], index: 2, kind: input, shape index: {}]   ;;  %s440_s3 = inlined_call_operand.hbm [shape: f32[1,1,128], index: 3, kind: output, shape index: {}]  }
   0x1   :  { %v23_v0 = vld [vmem:[%s437_s0] sm:$0xff]  ;;  %v24_v1 = vld [vmem:[%s437_s0 + $0x8] sm:$0xff]  ;;  %260 = vmatprep.subr.bf16.mxu0 %v324_v2  ;;  %vm356_vm1 = vmpackc.low %vm39_vm0, %vm39_vm0  ;;  %20 = vst [vmem:[#allocation2] sm:$0x1] %v325_v5  ;;  %257 = vmatprep.mubr.msk.f32.mxu0 %vm326_vm2, %v325_v5 }
   0x2   :  { %v261_v3 = vpack.c.bf16 %v24_v1, %v23_v0  ;;  %v25_v6 = vld [vmem:[%s437_s0 + $0x10] sm:$0xff]  ;;  %v26_v7 = vld [vmem:[%s437_s0 + $0x18] sm:$0xff] }
   0x4   :  { %263 = vmatpush3.bf16.xpose.msk.msra.mxu0 %vm356_vm1, %v261_v3 }
   0x5   :  { %264 = vmatprep.subr.bf16.mxu0 %v324_v2 }
   0x6   :  { %9 = vsyncpa [#allocation5], 0  ;;  %v265_v8 = vpack.c.bf16 %v26_v7, %v25_v6  ;;  %v27_v9 = vld [vmem:[%s437_s0 + $0x20] sm:$0xff]  ;;  %v28_v10 = vld [vmem:[%s437_s0 + $0x28] sm:$0xff]  ;;  %v168_v32 = vstv %s439_s2 }
   0x7   :  { %v269_v11 = vpack.c.bf16 %v28_v10, %v27_v9  ;;  %v29_v12 = vld [vmem:[%s437_s0 + $0x30] sm:$0xff]  ;;  %v30_v13 = vld [vmem:[%s437_s0 + $0x38] sm:$0xff]  ;;  %v31_v15 = vld [vmem:[%s437_s0 + $0x40] sm:$0xff] }
   0x8   :  { %v273_v14 = vpack.c.bf16 %v30_v13, %v29_v12  ;;  %v32_v16 = vld [vmem:[%s437_s0 + $0x48] sm:$0xff]  ;;  %v33_v18 = vld [vmem:[%s437_s0 + $0x50] sm:$0xff]  ;;  %v34_v19 = vld [vmem:[%s437_s0 + $0x58] sm:$0xff] }
   0x9   :  { %v277_v17 = vpack.c.bf16 %v32_v16, %v31_v15  ;;  %v281_v20 = vpack.c.bf16 %v34_v19, %v33_v18  ;;  %v35_v21 = vld [vmem:[%s437_s0 + $0x60] sm:$0xff]  ;;  %v36_v22 = vld [vmem:[%s437_s0 + $0x68] sm:$0xff]  ;;  %v37_v24 = vld [vmem:[%s437_s0 + $0x70] sm:$0xff] }
   0xa   :  { %v285_v23 = vpack.c.bf16 %v36_v22, %v35_v21  ;;  %v38_v25 = vld [vmem:[%s437_s0 + $0x78] sm:$0xff]  ;;  %v22_v27 = vld [vmem:[%s438_s1] sm:$0x1]  ;;  %s327_s0 = smov [#allocation4]  }
   0xb   :  { %v289_v26 = vpack.c.bf16 %v38_v25, %v37_v24  ;;  %v21_v28 = vld [vmem:[#allocation2] sm:$0x1]  ;;  %s183_s1 = sshll.u32 %s327_s0, 4  ;;  %s184_s1 = int_to_ptr.vmem [resolvable:$true] %s183_s1 }
   0xc   :  { %267 = vmatpush3.bf16.xpose.msk.msra.mxu0 %vm356_vm1, %v265_v8  ;;  %s300_s21 = scalar_lea.vmem %s184_s1, 16  ;;  %s304_s22 = scalar_lea.vmem %s184_s1, 32 }
   0xd   :  { %268 = vmatprep.subr.bf16.mxu0 %v324_v2  ;;  %p301_p0 = scmp.ne.s32.totalorder %s184_s1, %s300_s21  ;;  %p305_p1 = scmp.lt.s32.totalorder %s184_s1, %s184_s1 }
   0xe   :  { %p306_p2 = scmp.lt.s32.totalorder %s304_s22, %s300_s21 }
  0x10   :  { %p307_p3 = por %p306_p2, %p305_p1 }
  0x12   :  { %p308_p4 = pnand %p307_p3, %p301_p0 }
  0x14   :  { %271 = vmatpush3.bf16.xpose.msk.msra.mxu0 %vm356_vm1, %v269_v11 }
  0x15   :  { %272 = vmatprep.subr.bf16.mxu0 %v324_v2 }
  0x1c   :  { %275 = vmatpush3.bf16.xpose.msk.msra.mxu0 %vm356_vm1, %v273_v14 }
  0x1d   :  { %276 = vmatprep.subr.bf16.mxu0 %v324_v2 }
  0x24   :  { %279 = vmatpush3.bf16.xpose.msk.msra.mxu0 %vm356_vm1, %v277_v17 }
  0x25   :  { %280 = vmatprep.subr.bf16.mxu0 %v324_v2 }
  0x2c   :  { %283 = vmatpush3.bf16.xpose.msk.msra.mxu0 %vm356_vm1, %v281_v20 }
  0x2d   :  { %284 = vmatprep.subr.bf16.mxu0 %v324_v2 }
  0x34   :  { %287 = vmatpush3.bf16.xpose.msk.msra.mxu0 %vm356_vm1, %v285_v23 }
  0x35   :  { %288 = vmatprep.subr.bf16.mxu0 %v324_v2 }
  0x3c   :  { %291 = vmatpush3.bf16.xpose.msk.msra.mxu0 %vm356_vm1, %v289_v26 }
  0x43   :  { %258 = vmatmul.mubr.msk.f32.vlgmr.msra.gmra.mrb[0].mxu0 %vm39_vm0, %v22_v27 }
 0x116   :  { %v157_v29 = vpop.f32.mrb[0].mxu0 }
 0x117   :  { %v161_v30 = vadd.f32 %v157_v29, %v21_v28  ;;  %v259_v31 = vpop.f32.mrb[1].mxu0 }
 0x119   :  { %162 = vst [vmem:[#allocation2] sm:$0x1] %v161_v30 }
 0x120   :  { %v166_v33 = vld [vmem:[#allocation2] sm:$0x1] }
 0x121   :  { %v169_v34 = vadd.f32 %v168_v32, %v166_v33 }
 0x123   :  { %v170_v35 = vsub.f32 0.0, %v169_v34 }
 0x125   :  { %v171_v36 = vmul.f32 1.442695, %v170_v35 }
 0x127   :  { %296 = vpow2.f32 %v171_v36 }
 0x131   :  { %v297_v37 = vpop.eup %296 }
 0x132   :  { %v173_v38 = vadd.f32 1.0, %v297_v37 }
 0x134   :  { %298 = vrcp.f32 %v173_v38 }
 0x13e   :  { %v299_v39 = vpop.eup %298 }
 0x13f   :  { %176 = vst [vmem:[#allocation4] sm:$0x1] %v299_v39 }
 0x140   :  { %311 = shalt.err (!%p308_p4)
}
 0x141   :  { %s312_s24 = scalar_lea.hbm %s440_s3, 16 }
 0x142   :  { %p313_p5 = scmp.ne.s32.totalorder %s440_s3, %s312_s24  ;;  %p316_p6 = scmp.lt.u32.totalorder %s312_s24, %s440_s3 }
 0x144   :  { %p318_p7 = pnand %p316_p6, %p313_p5 }
 0x146   :  { %321 = shalt.err (!%p318_p7)
}
 0x147   :  { %186 = dma.vmem_to_hbm [thread:$0]  %s184_s1, 16, %s440_s3, [#allocation5]  }
 0x148   :  { %322 = dma.done.wait [#allocation5], 16  }
 0x149   :  { %323 = vsyncadd [#allocation5], 4294967280 }
 0x14a   :  { %190 = vsyncpa [#allocation5], 1 }

</bundles_post_ra>
